<compile_context>
chip_gen: v6e
topology: v6e:2x2x1
jax: 0.10.0
libtpu: 0.0.40
codegen_flags: <defaults>
</compile_context>

<pallas_src>
import functools
import math

import numpy as np
import jax
import jax.numpy as jnp
from jax import lax
from jax.experimental import pallas as pl
from jax.experimental.pallas import tpu as pltpu


def _round_up(v, m):
    return (v + m - 1) // m * m


# ----------------------------- Pallas kernel ------------------------------ #
def _equirec_kernel(resol_ref, x_ref, p_ref, o_ref, *, F, L_lat_pad, L_lon_pad,
                    east_west, pole_singularity, resident_out):
    l = pl.program_id(1)                  # level index within this bucket
    R_i = resol_ref[l]                    # int32 level resolution (SMEM scalar)
    Rf = R_i.astype(jnp.float32)
    lat_max_f = Rf                        # == params[l].shape[0] - 1
    lon_max_f = 2.0 * Rf                  # == params[l].shape[1] - 1

    Nb = x_ref.shape[1]
    # Coordinate math with N on lanes (full lane utilization).
    lat = (x_ref[0:1, :] + 90.0) / 180.0 * Rf           # (1, Nb)
    lon = x_ref[1:2, :] / 360.0 * 2.0 * Rf              # (1, Nb)
    fl_lat = jnp.floor(lat)
    fl_lon = jnp.floor(lon)

    # lon neighbors / weights are lat-corner invariant (pre pole-remap).
    nlon0 = jnp.clip(fl_lon, 0.0, lon_max_f)
    nlon1 = jnp.clip(fl_lon + 1.0, 0.0, lon_max_f)
    w_lon0 = 1.0 - jnp.abs(lon - nlon0)                 # weights use pre-wrap coords
    w_lon1 = 1.0 - jnp.abs(lon - nlon1)
    ilon0 = nlon0.astype(jnp.int32)
    ilon1 = nlon1.astype(jnp.int32)
    if east_west:
        ilon0 = jnp.where(ilon0 == 2 * R_i, 0, ilon0)
        ilon1 = jnp.where(ilon1 == 2 * R_i, 0, ilon1)

    iota_lat = lax.broadcasted_iota(jnp.int32, (L_lat_pad, Nb), 0)
    iota_lon = lax.broadcasted_iota(jnp.int32, (L_lon_pad, Nb), 0)

    # Corner-invariant weighted lon "two-hot" (collisions from wrap/clamp sum
    # exactly like the reference's 4-corner sum).
    th_base = (jnp.where(iota_lon == ilon0, w_lon0, 0.0)
               + jnp.where(iota_lon == ilon1, w_lon1, 0.0))        # (L_lon_pad, Nb)
    if pole_singularity:
        pole_th = jnp.where(iota_lon == 0, w_lon0 + w_lon1, 0.0)   # both lon idx -> 0

    th_corners = []
    oh_corners = []
    for da in (0, 1):                      # 2 lat corners
        nlat = jnp.clip(fl_lat + float(da), 0.0, lat_max_f)
        w_lat = 1.0 - jnp.abs(lat - nlat)
        ilat = nlat.astype(jnp.int32)
        oh_corners.append(jnp.where(iota_lat == ilat, w_lat, 0.0))  # (L_lat_pad, Nb)
        if pole_singularity:
            at_pole = (ilat == 0) | (ilat == R_i)                   # (1, Nb)
            th_corners.append(jnp.where(at_pole, pole_th, th_base))
        else:
            th_corners.append(th_base)

    rhs = jnp.concatenate(th_corners, axis=1)            # (L_lon_pad, 2*Nb)
    oh = jnp.concatenate(oh_corners, axis=1)             # (L_lat_pad, 2*Nb)

    # ONE MXU matmul per (block, level): both lat corners share the LHS.
    p_lvl = p_ref[l]                                     # (F*L_lat_pad, L_lon_pad)
    h = jnp.dot(p_lvl, rhs.astype(p_lvl.dtype),
                preferred_element_type=jnp.float32)      # (F*L_lat_pad, 2*Nb)

    # lat gather: weighted one-hot mask + sublane reduction (XLU), both corners
    # at once via the lane-concatenated layout; lane-dense (F, Nb) result.
    h_r = h.reshape(F, L_lat_pad, 2 * Nb)
    red = jnp.sum(h_r * oh[None, :, :], axis=1)          # (F, 2*Nb)
    out_val = red[:, :Nb] + red[:, Nb:]                  # (F, Nb)

    if resident_out:
        o_ref[l, :, :] = out_val        # output block resident across the l axis
    else:
        o_ref[0, :, :] = out_val


# ------------------------------- wrapper ----------------------------------- #
def equirec_enc(x, params_list, level_resols, *, F=2, east_west=True,
                pole_singularity=True, time=False, block_n=None,
                param_dtype=jnp.float32):
    """Pallas implementation of EQUIREC_ENC.forward.

    x: (N, 2) [lat_deg, lon_deg] (or (N, 3) with trailing time column if time=True).
    params_list: per-level grids, params_list[i].shape == (R_i+1, 2*R_i+1, F).
    param_dtype: jnp.float32 (default) or jnp.bfloat16 (faster MXU path, ~1e-3
      relative error — will not pass tight reference tolerances).
    """
    x = jnp.asarray(x, jnp.float32)
    if time:
        t_col = x[:, 2]
        x = x[:, :2]

    N = x.shape[0]
    n_levels = len(params_list)

    if block_n is None:
        block_n = min(1024, _round_up(max(N, 1), 128))
    assert block_n % 128 == 0
    N_pad = _round_up(N, block_n)
    num_nb = N_pad // block_n

    # x transposed & zero-padded to (2, N_pad): lane-dense coords, tiny DMA tiles.
    x_t = jnp.zeros((2, N_pad), jnp.float32).at[:, :N].set(x.T)

    # Bucket levels by padded lon extent (K dim of the matmul); pad lat per bucket.
    buckets = {}                                         # lon_pad -> [level idx]
    for i in range(n_levels):
        lp = _round_up(2 * int(level_resols[i]) + 1, 128)
        buckets.setdefault(lp, []).append(i)

    per_level_out = [None] * n_levels
    for L_lon_pad, idxs in buckets.items():
        bl = len(idxs)
        L_lat_pad = _round_up(max(int(level_resols[i]) + 1 for i in idxs), 8)

        # Pack each level grid as (F*L_lat_pad, L_lon_pad): F lat-row segments
        # stacked on sublanes, lon on lanes, zero padded (indices never hit pad).
        packed = []
        for i in idxs:
            p = jnp.asarray(params_list[i], jnp.float32)
            pt = jnp.transpose(p, (2, 0, 1))             # (F, la, lo)
            pt = jnp.pad(pt, ((0, 0),
                              (0, L_lat_pad - p.shape[0]),
                              (0, L_lon_pad - p.shape[1])))
            packed.append(pt.reshape(F * L_lat_pad, L_lon_pad))
        p_packed = jnp.stack(packed, axis=0).astype(param_dtype)
        resols = jnp.asarray([int(level_resols[i]) for i in idxs], jnp.int32)

        # Resident-across-levels output only when the sample-block axis alone
        # still feeds megacore (>= 2 parallel steps); otherwise keep the level
        # axis "parallel" so v7x's two TensorCores both stay busy.
        resident_out = num_nb >= 2
        if resident_out:
            out_spec = pl.BlockSpec((bl, F, block_n), lambda nb, l, r: (0, 0, nb))
            dim_sem = ("parallel", "arbitrary")
        else:
            out_spec = pl.BlockSpec((1, F, block_n), lambda nb, l, r: (l, 0, nb))
            dim_sem = ("parallel", "parallel")

        kernel = functools.partial(
            _equirec_kernel, F=F, L_lat_pad=L_lat_pad, L_lon_pad=L_lon_pad,
            east_west=east_west, pole_singularity=pole_singularity,
            resident_out=resident_out)

        out = pl.pallas_call(
            kernel,
            out_shape=jax.ShapeDtypeStruct((bl, F, N_pad), jnp.float32),
            grid_spec=pltpu.PrefetchScalarGridSpec(
                num_scalar_prefetch=1,
                grid=(num_nb, bl),
                in_specs=[
                    # coordinates: block changes only when nb changes
                    pl.BlockSpec((2, block_n), lambda nb, l, r: (0, nb)),
                    # parameter grids: resident in VMEM (constant block index)
                    pl.BlockSpec((bl, F * L_lat_pad, L_lon_pad),
                                 lambda nb, l, r: (0, 0, 0)),
                ],
                out_specs=out_spec,
            ),
            compiler_params=pltpu.CompilerParams(
                dimension_semantics=dim_sem,
                vmem_limit_bytes=32 * 1024 * 1024),
        )(resols, x_t, p_packed)

        out = out[:, :, :N]                              # crop lane padding
        for j, i in enumerate(idxs):
            per_level_out[i] = out[j]                    # (F, N)

    full = jnp.stack(per_level_out, axis=0)              # (n_levels, F, N)
    full = jnp.transpose(full, (2, 0, 1)).reshape(N, n_levels * F)
    if time:
        full = jnp.concatenate([full, t_col[:, None]], axis=-1)
    return full


# --------------------------- pure-numpy reference -------------------------- #
def _ref_forward(x, params_list, resols, east_west, pole_singularity):
    x = np.asarray(x, np.float32)
    dx_dy = np.array([[0, 0], [0, 1], [1, 0], [1, 1]], np.int64)
    outs = []
    for i, P in enumerate(params_list):
        P = np.asarray(P, np.float32)
        R = float(resols[i])
        lat = (x[:, 0] + 90.0) / 180.0 * R
        lon = x[:, 1] / 360.0 * 2.0 * R
        q = np.stack([lat, lon], -1)
        pc = np.floor(q).astype(np.int64)
        nb = pc[:, None, :] + dx_dy[None]
        nb[..., 0] = np.clip(nb[..., 0], 0, P.shape[0] - 1)
        nb[..., 1] = np.clip(nb[..., 1], 0, P.shape[1] - 1)
        dist = np.abs(q[:, None, :] - nb.astype(np.float32))
        w = np.prod(1.0 - dist, -1)
        ilat, ilon = nb[..., 0].copy(), nb[..., 1].copy()
        if east_west:
            ilon = np.where(ilon == P.shape[1] - 1, 0, ilon)
        if pole_singularity:
            ilon = np.where(ilat == 0, 0, ilon)
            ilon = np.where(ilat == P.shape[0] - 1, 0, ilon)
        vals = P[ilat, ilon]                               # (N, 4, F)
        outs.append(np.sum(w[..., None] * vals, axis=1))
    return np.concatenate(outs, -1)


# ---------------------------------- main ----------------------------------- #
if __name__ == "__main__":
    # Module hyper-parameters (defaults of EQUIREC_ENC).
    n_levels, F, base_resol, upscale = 7, 2, 90, 0.5
    great_circle = True          # note: unused in the reference forward pass
    pole_singularity = True
    east_west = True

    level_resols = [int(math.floor(base_resol * upscale ** i)) for i in range(n_levels)]

    key = jax.random.PRNGKey(0)
    pkeys = jax.random.split(key, n_levels + 1)

    # Deterministic parameter init: uniform(-1e-4, 1e-4), per-level grids.
    params_list = []
    for i in range(n_levels):
        shape = (level_resols[i] + 1, level_resols[i] * 2 + 1, F)
        params_list.append(jax.random.uniform(
            pkeys[i], shape, jnp.float32, minval=-1e-4, maxval=1e-4))

    # --- test 1: small batch (per-level output path, both grid axes parallel) ---
    N = 16
    xkeys = jax.random.split(pkeys[-1], 4)
    lat = jax.random.uniform(xkeys[0], (N,), jnp.float32, minval=-90.0, maxval=90.0)
    lon = jax.random.uniform(xkeys[1], (N,), jnp.float32, minval=0.0, maxval=360.0)
    x = jnp.stack([lat, lon], axis=-1)                     # (N, 2)

    out = equirec_enc(x, params_list, level_resols, F=F,
                      east_west=east_west, pole_singularity=pole_singularity)
    out = jax.block_until_ready(out)
    ref = _ref_forward(np.asarray(x), [np.asarray(p) for p in params_list],
                       level_resols, east_west, pole_singularity)
    np.testing.assert_allclose(np.asarray(out), ref, rtol=1e-5, atol=1e-6)

    # --- test 2: larger batch with explicit block_n -> exercises the resident-
    # output (level axis "arbitrary") path and multi-block grid. ---
    N2 = 300
    lat2 = jax.random.uniform(xkeys[2], (N2,), jnp.float32, minval=-90.0, maxval=90.0)
    lon2 = jax.random.uniform(xkeys[3], (N2,), jnp.float32, minval=0.0, maxval=360.0)
    x2 = jnp.stack([lat2, lon2], axis=-1)

    out2 = equirec_enc(x2, params_list, level_resols, F=F,
                       east_west=east_west, pole_singularity=pole_singularity,
                       block_n=128)
    out2 = jax.block_until_ready(out2)
    ref2 = _ref_forward(np.asarray(x2), [np.asarray(p) for p in params_list],
                        level_resols, east_west, pole_singularity)
    np.testing.assert_allclose(np.asarray(out2), ref2, rtol=1e-5, atol=1e-6)

    print("KERNEL_OK")
</pallas_src>

<mosaic_0001>
module attributes {stable_mosaic.version = 11 : i64} {
  func.func @_equirec_kernel(%arg0: i32, %arg1: i32, %arg2: memref<1xi32, #tpu.memory_space<smem>>, %arg3: memref<2x128xf32, #tpu.memory_space<vmem>>, %arg4: memref<1x192x256xf32, #tpu.memory_space<vmem>>, %arg5: memref<1x2x128xf32, #tpu.memory_space<vmem>>) attributes {dimension_semantics = [#tpu.dimension_semantics<parallel>, #tpu.dimension_semantics<parallel>], iteration_bounds = array<i64: 1, 1>, scalar_prefetch = 1 : i64, scratch_operands = 0 : i64, tpu.core_type = #tpu.core_type<tc>, window_params = [{transform_indices = @transform_0, window_bounds = array<i64: 2, 128>}, {pipeline_mode = #tpu.pipeline_mode<synchronous>, transform_indices = @transform_1, window_bounds = array<i64: 1, 192, 256>}, {transform_indices = @transform_2, window_bounds = array<i64: 1, 2, 128>}]} {
    %0 = arith.index_cast %arg1 : i32 to index
    %1 = memref.load %arg2[%0] : memref<1xi32, #tpu.memory_space<smem>>
    %2 = arith.sitofp %1 : i32 to f32
    %cst = arith.constant 2.000000e+00 : f32
    %3 = arith.mulf %cst, %2 : f32
    %c0 = arith.constant 0 : index
    %c0_0 = arith.constant 0 : index
    %4 = vector.load %arg3[%c0, %c0_0] : memref<2x128xf32, #tpu.memory_space<vmem>>, vector<1x128xf32>
    %cst_1 = arith.constant 9.000000e+01 : f32
    %5 = vector.broadcast %cst_1 : f32 to vector<1x128xf32>
    %6 = arith.addf %4, %5 : vector<1x128xf32>
    %cst_2 = arith.constant 1.800000e+02 : f32
    %7 = vector.broadcast %cst_2 : f32 to vector<1x128xf32>
    %8 = arith.divf %6, %7 : vector<1x128xf32>
    %9 = vector.broadcast %2 : f32 to vector<1x128xf32>
    %10 = arith.mulf %8, %9 : vector<1x128xf32>
    %c1 = arith.constant 1 : index
    %c0_3 = arith.constant 0 : index
    %11 = vector.load %arg3[%c1, %c0_3] : memref<2x128xf32, #tpu.memory_space<vmem>>, vector<1x128xf32>
    %cst_4 = arith.constant 3.600000e+02 : f32
    %12 = vector.broadcast %cst_4 : f32 to vector<1x128xf32>
    %13 = arith.divf %11, %12 : vector<1x128xf32>
    %cst_5 = arith.constant 2.000000e+00 : f32
    %14 = vector.broadcast %cst_5 : f32 to vector<1x128xf32>
    %15 = arith.mulf %13, %14 : vector<1x128xf32>
    %16 = vector.broadcast %2 : f32 to vector<1x128xf32>
    %17 = arith.mulf %15, %16 : vector<1x128xf32>
    %18 = math.floor %10 : vector<1x128xf32>
    %19 = math.floor %17 : vector<1x128xf32>
    %cst_6 = arith.constant 0.000000e+00 : f32
    %20 = vector.broadcast %cst_6 : f32 to vector<1x128xf32>
    %21 = arith.maximumf %20, %19 : vector<1x128xf32>
    %22 = vector.broadcast %3 : f32 to vector<1x128xf32>
    %23 = arith.minimumf %22, %21 : vector<1x128xf32>
    %cst_7 = arith.constant 1.000000e+00 : f32
    %24 = vector.broadcast %cst_7 : f32 to vector<1x128xf32>
    %25 = arith.addf %19, %24 : vector<1x128xf32>
    %cst_8 = arith.constant 0.000000e+00 : f32
    %26 = vector.broadcast %cst_8 : f32 to vector<1x128xf32>
    %27 = arith.maximumf %26, %25 : vector<1x128xf32>
    %28 = vector.broadcast %3 : f32 to vector<1x128xf32>
    %29 = arith.minimumf %28, %27 : vector<1x128xf32>
    %30 = arith.subf %17, %23 : vector<1x128xf32>
    %31 = math.absf %30 : vector<1x128xf32>
    %cst_9 = arith.constant 1.000000e+00 : f32
    %32 = vector.broadcast %cst_9 : f32 to vector<1x128xf32>
    %33 = arith.subf %32, %31 : vector<1x128xf32>
    %34 = arith.subf %17, %29 : vector<1x128xf32>
    %35 = math.absf %34 : vector<1x128xf32>
    %cst_10 = arith.constant 1.000000e+00 : f32
    %36 = vector.broadcast %cst_10 : f32 to vector<1x128xf32>
    %37 = arith.subf %36, %35 : vector<1x128xf32>
    %38 = arith.fptosi %23 : vector<1x128xf32> to vector<1x128xi32>
    %39 = arith.fptosi %29 : vector<1x128xf32> to vector<1x128xi32>
    %c2_i32 = arith.constant 2 : i32
    %40 = arith.muli %c2_i32, %1 : i32
    %41 = vector.broadcast %40 : i32 to vector<1x128xi32>
    %42 = arith.cmpi eq, %38, %41 : vector<1x128xi32>
    %c0_i32 = arith.constant 0 : i32
    %43 = vector.broadcast %c0_i32 : i32 to vector<1x128xi32>
    %44 = arith.select %42, %43, %38 : vector<1x128xi1>, vector<1x128xi32>
    %c2_i32_11 = arith.constant 2 : i32
    %45 = arith.muli %c2_i32_11, %1 : i32
    %46 = vector.broadcast %45 : i32 to vector<1x128xi32>
    %47 = arith.cmpi eq, %39, %46 : vector<1x128xi32>
    %c0_i32_12 = arith.constant 0 : i32
    %48 = vector.broadcast %c0_i32_12 : i32 to vector<1x128xi32>
    %49 = arith.select %47, %48, %39 : vector<1x128xi1>, vector<1x128xi32>
    %50 = tpu.iota {dimensions = array<i32: 0>} : vector<96x128xi32>
    %51 = tpu.iota {dimensions = array<i32: 0>} : vector<256x128xi32>
    %52 = vector.broadcast %44 : vector<1x128xi32> to vector<256x128xi32>
    %53 = arith.cmpi eq, %51, %52 : vector<256x128xi32>
    %cst_13 = arith.constant 0.000000e+00 : f32
    %54 = vector.shape_cast %33 : vector<1x128xf32> to vector<1x128xf32>
    %55 = vector.broadcast %54 : vector<1x128xf32> to vector<256x128xf32>
    %56 = vector.broadcast %cst_13 : f32 to vector<256x128xf32>
    %57 = arith.select %53, %55, %56 : vector<256x128xi1>, vector<256x128xf32>
    %58 = vector.broadcast %49 : vector<1x128xi32> to vector<256x128xi32>
    %59 = arith.cmpi eq, %51, %58 : vector<256x128xi32>
    %cst_14 = arith.constant 0.000000e+00 : f32
    %60 = vector.shape_cast %37 : vector<1x128xf32> to vector<1x128xf32>
    %61 = vector.broadcast %60 : vector<1x128xf32> to vector<256x128xf32>
    %62 = vector.broadcast %cst_14 : f32 to vector<256x128xf32>
    %63 = arith.select %59, %61, %62 : vector<256x128xi1>, vector<256x128xf32>
    %64 = arith.addf %57, %63 : vector<256x128xf32>
    %c0_i32_15 = arith.constant 0 : i32
    %65 = vector.broadcast %c0_i32_15 : i32 to vector<256x128xi32>
    %66 = arith.cmpi eq, %51, %65 : vector<256x128xi32>
    %67 = arith.addf %33, %37 : vector<1x128xf32>
    %cst_16 = arith.constant 0.000000e+00 : f32
    %68 = vector.shape_cast %67 : vector<1x128xf32> to vector<1x128xf32>
    %69 = vector.broadcast %68 : vector<1x128xf32> to vector<256x128xf32>
    %70 = vector.broadcast %cst_16 : f32 to vector<256x128xf32>
    %71 = arith.select %66, %69, %70 : vector<256x128xi1>, vector<256x128xf32>
    %cst_17 = arith.constant 0.000000e+00 : f32
    %72 = vector.broadcast %cst_17 : f32 to vector<1x128xf32>
    %73 = arith.addf %18, %72 : vector<1x128xf32>
    %cst_18 = arith.constant 0.000000e+00 : f32
    %74 = vector.broadcast %cst_18 : f32 to vector<1x128xf32>
    %75 = arith.maximumf %74, %73 : vector<1x128xf32>
    %76 = vector.broadcast %2 : f32 to vector<1x128xf32>
    %77 = arith.minimumf %76, %75 : vector<1x128xf32>
    %78 = arith.subf %10, %77 : vector<1x128xf32>
    %79 = math.absf %78 : vector<1x128xf32>
    %cst_19 = arith.constant 1.000000e+00 : f32
    %80 = vector.broadcast %cst_19 : f32 to vector<1x128xf32>
    %81 = arith.subf %80, %79 : vector<1x128xf32>
    %82 = arith.fptosi %77 : vector<1x128xf32> to vector<1x128xi32>
    %83 = vector.broadcast %82 : vector<1x128xi32> to vector<96x128xi32>
    %84 = arith.cmpi eq, %50, %83 : vector<96x128xi32>
    %cst_20 = arith.constant 0.000000e+00 : f32
    %85 = vector.shape_cast %81 : vector<1x128xf32> to vector<1x128xf32>
    %86 = vector.broadcast %85 : vector<1x128xf32> to vector<96x128xf32>
    %87 = vector.broadcast %cst_20 : f32 to vector<96x128xf32>
    %88 = arith.select %84, %86, %87 : vector<96x128xi1>, vector<96x128xf32>
    %c0_i32_21 = arith.constant 0 : i32
    %89 = vector.broadcast %c0_i32_21 : i32 to vector<1x128xi32>
    %90 = arith.cmpi eq, %82, %89 : vector<1x128xi32>
    %91 = vector.broadcast %1 : i32 to vector<1x128xi32>
    %92 = arith.cmpi eq, %82, %91 : vector<1x128xi32>
    %93 = arith.ori %90, %92 : vector<1x128xi1>
    %94 = vector.shape_cast %93 : vector<1x128xi1> to vector<1x128xi1>
    %95 = vector.broadcast %94 : vector<1x128xi1> to vector<256x128xi1>
    %96 = arith.select %95, %71, %64 : vector<256x128xi1>, vector<256x128xf32>
    %cst_22 = arith.constant 1.000000e+00 : f32
    %97 = vector.broadcast %cst_22 : f32 to vector<1x128xf32>
    %98 = arith.addf %18, %97 : vector<1x128xf32>
    %cst_23 = arith.constant 0.000000e+00 : f32
    %99 = vector.broadcast %cst_23 : f32 to vector<1x128xf32>
    %100 = arith.maximumf %99, %98 : vector<1x128xf32>
    %101 = vector.broadcast %2 : f32 to vector<1x128xf32>
    %102 = arith.minimumf %101, %100 : vector<1x128xf32>
    %103 = arith.subf %10, %102 : vector<1x128xf32>
    %104 = math.absf %103 : vector<1x128xf32>
    %cst_24 = arith.constant 1.000000e+00 : f32
    %105 = vector.broadcast %cst_24 : f32 to vector<1x128xf32>
    %106 = arith.subf %105, %104 : vector<1x128xf32>
    %107 = arith.fptosi %102 : vector<1x128xf32> to vector<1x128xi32>
    %108 = vector.broadcast %107 : vector<1x128xi32> to vector<96x128xi32>
    %109 = arith.cmpi eq, %50, %108 : vector<96x128xi32>
    %cst_25 = arith.constant 0.000000e+00 : f32
    %110 = vector.shape_cast %106 : vector<1x128xf32> to vector<1x128xf32>
    %111 = vector.broadcast %110 : vector<1x128xf32> to vector<96x128xf32>
    %112 = vector.broadcast %cst_25 : f32 to vector<96x128xf32>
    %113 = arith.select %109, %111, %112 : vector<96x128xi1>, vector<96x128xf32>
    %c0_i32_26 = arith.constant 0 : i32
    %114 = vector.broadcast %c0_i32_26 : i32 to vector<1x128xi32>
    %115 = arith.cmpi eq, %107, %114 : vector<1x128xi32>
    %116 = vector.broadcast %1 : i32 to vector<1x128xi32>
    %117 = arith.cmpi eq, %107, %116 : vector<1x128xi32>
    %118 = arith.ori %115, %117 : vector<1x128xi1>
    %119 = vector.shape_cast %118 : vector<1x128xi1> to vector<1x128xi1>
    %120 = vector.broadcast %119 : vector<1x128xi1> to vector<256x128xi1>
    %121 = arith.select %120, %71, %64 : vector<256x128xi1>, vector<256x128xf32>
    %122 = tpu.concatenate %96, %121 in 1 : vector<256x128xf32>, vector<256x128xf32> -> vector<256x256xf32>
    %123 = tpu.concatenate %88, %113 in 1 : vector<96x128xf32>, vector<96x128xf32> -> vector<96x256xf32>
    %124 = arith.index_cast %arg1 : i32 to index
    %c0_27 = arith.constant 0 : index
    %c0_28 = arith.constant 0 : index
    %125 = vector.load %arg4[%124, %c0_27, %c0_28] : memref<1x192x256xf32, #tpu.memory_space<vmem>>, vector<1x192x256xf32>
    %126 = vector.shape_cast %125 : vector<1x192x256xf32> to vector<192x256xf32>
    %cst_29 = arith.constant dense<0.000000e+00> : vector<192x256xf32>
    %127 = tpu.matmul %126, %122, %cst_29 {dimension_numbers = #tpu.dot_dimension_numbers<[1], [0], [0], [1], [0, 0, 1, 1], [], []>} : vector<192x256xf32>, vector<256x256xf32>, vector<192x256xf32> -> vector<192x256xf32>
    %128 = vector.shape_cast %127 : vector<192x256xf32> to vector<2x96x256xf32>
    %129 = vector.shape_cast %123 : vector<96x256xf32> to vector<1x96x256xf32>
    %130 = vector.broadcast %129 : vector<1x96x256xf32> to vector<2x96x256xf32>
    %131 = arith.mulf %128, %130 : vector<2x96x256xf32>
    %cst_30 = arith.constant dense<0.000000e+00> : vector<2x256xf32>
    %132 = vector.multi_reduction <add>, %131, %cst_30 [1] : vector<2x96x256xf32> to vector<2x256xf32>
    %133 = vector.extract_strided_slice %132 {offsets = [0, 0], sizes = [2, 128], strides = [1, 1]} : vector<2x256xf32> to vector<2x128xf32>
    %134 = vector.extract_strided_slice %132 {offsets = [0, 128], sizes = [2, 128], strides = [1, 1]} : vector<2x256xf32> to vector<2x128xf32>
    %135 = arith.addf %133, %134 : vector<2x128xf32>
    %c0_31 = arith.constant 0 : index
    %c0_32 = arith.constant 0 : index
    %c0_33 = arith.constant 0 : index
    %136 = vector.load %arg5[%c0_31, %c0_32, %c0_33] : memref<1x2x128xf32, #tpu.memory_space<vmem>>, vector<1x2x128xf32>
    %137 = vector.shape_cast %136 : vector<1x2x128xf32> to vector<2x128xf32>
    %138 = vector.shape_cast %135 : vector<2x128xf32> to vector<1x2x128xf32>
    tpu.vector_store %arg5[%c0_31, %c0_32, %c0_33], %138 {strides = array<i32>} : memref<1x2x128xf32, #tpu.memory_space<vmem>>, vector<1x2x128xf32>,
    return
  }
  func.func @transform_0(%arg0: i32, %arg1: i32, %arg2: memref<1xi32, #tpu.memory_space<smem>>) -> (i32, i32) {
    %c0_i32 = arith.constant 0 : i32
    %c0_i32_0 = arith.constant 0 : i32
    return %c0_i32, %arg0 : i32, i32
  }
  func.func @transform_1(%arg0: i32, %arg1: i32, %arg2: memref<1xi32, #tpu.memory_space<smem>>) -> (i32, i32, i32) {
    %c0_i32 = arith.constant 0 : i32
    %c0_i32_0 = arith.constant 0 : i32
    %c0_i32_1 = arith.constant 0 : i32
    %c0_i32_2 = arith.constant 0 : i32
    return %c0_i32, %c0_i32_0, %c0_i32_1 : i32, i32, i32
  }
  func.func @transform_2(%arg0: i32, %arg1: i32, %arg2: memref<1xi32, #tpu.memory_space<smem>>) -> (i32, i32, i32) {
    %c0_i32 = arith.constant 0 : i32
    %c0_i32_0 = arith.constant 0 : i32
    return %arg1, %c0_i32, %arg0 : i32, i32, i32
  }
}

</mosaic_0001>

<bundles_post_ra>
// kernel: tpu_custom_call.1
= control target key start
LH: loop header
LB: loop body
LE: loop exit
PB: predicated region body
PF: predicated region fallthrough
CT: control target
= control target key end

     0   :  { %9 = vsyncpa [#allocation5], 0  ;;  %s1909_s0 = inlined_call_operand.<no memory space> [shape: s32[1], index: 0, kind: input, shape index: {}]   ;;  %s1910_s1 = inlined_call_operand.vmem [shape: f32[2,128], index: 1, kind: input, shape index: {}]   ;;  %s1911_s2 = inlined_call_operand.hbm [shape: f32[1,192,256], index: 2, kind: input, shape index: {}]   ;;  %s1912_s3 = inlined_call_operand.hbm [shape: f32[1,2,128], index: 3, kind: output, shape index: {}]  }
   0x1   :  { %10 = vsyncpa [#allocation6], 0  ;;  %s1148_s12 = smov [#allocation4]  }
   0x2   :  { %s18_s13 = sshll.u32 %s1148_s12, 4  ;;  %s19_s13 = int_to_ptr.vmem [resolvable:$true] %s18_s13 }
   0x3   :  { %s1112_s14 = scalar_lea.vmem %s19_s13, 6144  ;;  %p1117_p1 = scmp.lt.s32.totalorder %s19_s13, %s19_s13 }
   0x4   :  { %p1113_p0 = scmp.ne.s32.totalorder %s19_s13, %s1112_s14  ;;  %p1118_p2 = scmp.lt.s32.totalorder %s1112_s14, %s1112_s14 }
   0x6   :  { %p1119_p3 = por %p1118_p2, %p1117_p1 }
   0x8   :  { %p1120_p4 = pnand %p1119_p3, %p1113_p0 }
   0xa   :  { %1123 = shalt.err (!%p1120_p4)
}
   0xb   :  { %s1149_s15 = smov 256   ;;  %s1150_s16 = smov 16  }
   0xc   :  { %24 = dma.hbm_to_vmem [thread:$0]  %s1911_s2, 6144, %s19_s13, [#allocation5], %s1149_s15, %s1149_s15, %s1150_s16  }
   0xd   :  { %1144 = dma.done.wait [#allocation5], 6144  }
   0xe   :  { %1145 = vsyncadd [#allocation5], 4294961152  ;;  %s29_s21 = scvt.s32.f32 %s1909_s0  ;;  %v31_v0 = vld [vmem:[%s1910_s1] sm:$0x1]  ;;  %v37_v1 = vld [vmem:[%s1910_s1 + $0x1] sm:$0x1]  ;;  %v64_v9 = vlaneseq  ;;  %v382_v21 = vstv %s1909_s0 }
   0xf   :  { %v32_v2 = vadd.f32 90.0, %v31_v0  ;;  %v39_v3 = vmul.f32 0.0027777778, %v37_v1  ;;  %v507_v4 = vld [vmem:[#allocation4 + $0x8] sm:$0xff]  ;;  %s902_s1 = sshll.u32 %s1909_s0, 1  ;;  %v1151_v55 = vmov 0  }
  0x10   :  { %v35_v5 = vstv %s29_s21  ;;  %618 = vmatprep.mubr.f32.mxu0 %v507_v4  ;;  %v531_v6 = vld [vmem:[#allocation4 + $0xc8] sm:$0xff]  ;;  %s30_s2 = smul.f32 2.0, %s29_s21  ;;  %v1191_v15 = vshrl.u32 %v64_v9, 7  ;;  %v59_v20 = vstv %s902_s1  ;;  %s1152_s0 = smov [#allocation7]  }
  0x11   :  { %v34_v7 = vmul.f32 0.0055555557, %v32_v2  ;;  %v40_v8 = vmul.f32 2.0, %v39_v3  ;;  %690 = vmatprep.mubr.f32.mxu1 %v531_v6  ;;  %s893_s30 = sshll.u32 %s1152_s0, 4  ;;  %s894_s30 = int_to_ptr.vmem [resolvable:$true] %s893_s30 }
  0x12   :  { %v45_v14 = vstv %s30_s2  ;;  %v80_v26 = vadd.s32 120, %v1191_v15  ;;  %v1200_v27 = vsub.s32 0, %v1191_v15  ;;  %v79_v28 = vadd.s32 112, %v1191_v15  ;;  %s1124_s4 = scalar_lea.vmem %s894_s30, 32  ;;  %p1129_p6 = scmp.lt.s32.totalorder %s894_s30, %s894_s30 }
  0x13   :  { %v1185_v10 = vmul.f32 %v35_v5, %v34_v7  ;;  %v41_v11 = vmul.f32 %v40_v8, %v35_v5  ;;  %v78_v29 = vadd.s32 104, %v1191_v15  ;;  %v77_v35 = vadd.s32 96, %v1191_v15  ;;  %v510_v8 = vld [vmem:[#allocation4 + $0x20] sm:$0xff]  ;;  %p1125_p5 = scmp.ne.s32.totalorder %s894_s30, %s1124_s4  ;;  %p1130_p7 = scmp.lt.s32.totalorder %s1124_s4, %s1124_s4 }
  0x14   :  { %v1209_v36 = vadd.s32 88, %v1191_v15  ;;  %v1212_v37 = vadd.s32 80, %v1191_v15  ;;  %v1220_v44 = vadd.s32 72, %v1191_v15  ;;  %v1223_v45 = vadd.s32 64, %v1191_v15 }
  0x15   :  { %v42_v12 = vfloor.f32 %v1185_v10  ;;  %v43_v13 = vfloor.f32 %v41_v11  ;;  %p1131_p8 = por %p1130_p7, %p1129_p6 }
  0x17   :  { %v44_v16 = vmax.f32 %v43_v13, 0.0  ;;  %v47_v17 = vadd.f32 1.0, %v43_v13  ;;  %v343_v18 = vmax.f32 %v42_v12, 0.0  ;;  %v423_v19 = vadd.f32 1.0, %v42_v12  ;;  %p1132_p9 = pnand %p1131_p8, %p1125_p5 }
  0x19   :  { %v46_v22 = vmin.f32 %v45_v14, %v44_v16  ;;  %v48_v23 = vmax.f32 %v47_v17, 0.0  ;;  %v1196_v24 = vmin.f32 %v35_v5, %v343_v18  ;;  %v424_v25 = vmax.f32 %v423_v19, 0.0 }
  0x1a   :  { %v1306_v17 = vadd.s32 56, %v1191_v15  ;;  %v1317_v19 = vadd.s32 48, %v1191_v15 }
  0x1b   :  { %v49_v30 = vmin.f32 %v45_v14, %v48_v23  ;;  %v50_v31 = vsub.f32 %v41_v11, %v46_v22  ;;  %v1091_v32 = vtrunc.f32 %v46_v22  ;;  %v1095_v33 = vtrunc.f32 %v1196_v24 }
  0x1c   :  { %v1205_v34 = vmin.f32 %v35_v5, %v424_v25  ;;  %v512_v5 = vld [vmem:[#allocation4 + $0x30] sm:$0xff] }
  0x1d   :  { %v1214_v38 = vand.u32 2147483647, %v50_v31  ;;  %v53_v39 = vsub.f32 %v41_v11, %v49_v30  ;;  %v1092_v40 = vcvt.f32.s32 %v1091_v32  ;;  %v1093_v41 = vtrunc.f32 %v49_v30 }
  0x1e   :  { %v1216_v42 = vcvt.f32.s32 %v1095_v33  ;;  %v1097_v43 = vtrunc.f32 %v1205_v34  ;;  %v1359_v32 = vadd.s32 32, %v1191_v15 }
  0x1f   :  { %v52_v46 = vsub.f32 1.0, %v1214_v38  ;;  %v1226_v47 = vand.u32 2147483647, %v53_v39  ;;  %v1094_v48 = vcvt.f32.s32 %v1093_v41  ;;  %vm60_vm0 = vcmp.eq.s32.totalorder %v1092_v40, %v59_v20 }
  0x20   :  { %v61_v49 = vsel %vm60_vm0, 0, %v1092_v40  ;;  %vm381_vm1 = vcmp.eq.s32.totalorder %v1216_v42, 0  ;;  %vm383_vm2 = vcmp.eq.s32.totalorder %v1216_v42, %v382_v21  ;;  %v1230_v50 = vcvt.f32.s32 %v1097_v43 }
  0x21   :  { %v55_v51 = vsub.f32 1.0, %v1226_v47  ;;  %vm62_vm3 = vcmp.eq.s32.totalorder %v1094_v48, %v59_v20  ;;  %v1234_v52 = vrot.slane %v61_v49, %v1200_v27  ;;  %v1239_v53 = vrot.slane %v52_v46, %v1200_v27  ;;  %vm384_vm4 = vmor %vm381_vm1, %vm383_vm2 }
  0x22   :  { %v63_v54 = vsel %vm62_vm3, 0, %v1094_v48  ;;  %v385_v56 = vsel %vm384_vm4, 1, %v1151_v55  ;;  %vm462_vm5 = vcmp.eq.s32.totalorder %v1230_v50, 0  ;;  %vm463_vm6 = vcmp.eq.s32.totalorder %v1230_v50, %v382_v21 }
  0x23   :  { %vm116_vm7 = vcmp.eq.s32.totalorder %v80_v26, %v1234_v52  ;;  %v1245_v57 = vrot.slane %v63_v54, %v1200_v27  ;;  %v1250_v58 = vrot.slane %v55_v51, %v1200_v27  ;;  %v389_v59 = vrot.slane %v385_v56, %v1200_v27  ;;  %vm464_vm8 = vmor %vm462_vm5, %vm463_vm6 }
  0x24   :  { %v152_v60 = vsel %vm116_vm7, %v1239_v53, 0.0  ;;  %v465_v61 = vsel %vm464_vm8, 1, %v1151_v55  ;;  %vm115_vm9 = vcmp.eq.s32.totalorder %v79_v28, %v1234_v52  ;;  %vm114_vm10 = vcmp.eq.s32.totalorder %v78_v29, %v1234_v52 }
  0x25   :  { %vm188_vm11 = vcmp.eq.s32.totalorder %v80_v26, %v1245_v57  ;;  %vm1257_vm12 = vcmp.eq.s32.totalorder %v389_v59, 1  ;;  %v469_v63 = vrot.slane %v465_v61, %v1200_v27  ;;  %v151_v0 = vsel %vm115_vm9, %v1239_v53, 0.0 }
  0x26   :  { %v224_v1 = vsel %vm188_vm11, %v1250_v58, 0.0  ;;  %vm187_vm13 = vcmp.eq.s32.totalorder %v79_v28, %v1245_v57  ;;  %v150_v2 = vsel %vm114_vm10, %v1239_v53, 0.0  ;;  %vm186_vm14 = vcmp.eq.s32.totalorder %v78_v29, %v1245_v57  ;;  %vm1273_vm0 = vmneg %vm1257_vm12 }
  0x27   :  { %v256_v3 = vadd.f32 %v224_v1, %v152_v60  ;;  %vm1267_vm15 = vcmp.eq.s32.totalorder %v469_v63, 1  ;;  %v223_v6 = vsel %vm187_vm13, %v1250_v58, 0.0  ;;  %v222_v7 = vsel %vm186_vm14, %v1250_v58, 0.0 }
  0x28   :  { %vm1281_vm1 = vmneg %vm1267_vm15  ;;  %v255_v9 = vadd.f32 %v223_v6, %v151_v0  ;;  %v254_v11 = vadd.f32 %v222_v7, %v150_v2  ;;  %vm113_vm2 = vcmp.eq.s32.totalorder %v77_v35, %v1234_v52  ;;  %vm185_vm3 = vcmp.eq.s32.totalorder %v77_v35, %v1245_v57 }
  0x29   :  { %904 = vmatprep.subr.msk.mxu0 %vm1281_vm1, %v256_v3  ;;  %1027 = vmatprep.subr.msk.mxu1 %vm1281_vm1, %v256_v3  ;;  %v149_v12 = vsel %vm113_vm2, %v1239_v53, 0.0  ;;  %v221_v13 = vsel %vm185_vm3, %v1250_v58, 0.0  ;;  %vm112_vm4 = vcmp.eq.s32.totalorder %v1209_v36, %v1234_v52  ;;  %vm184_vm5 = vcmp.eq.s32.totalorder %v1209_v36, %v1245_v57 }
  0x2a   :  { %906 = vmatpush1.msk.msra.mxu0 %vm1273_vm0, %v256_v3  ;;  %1059 = vmatpush1.msk.msra.mxu1 %vm1273_vm0, %v256_v3  ;;  %v148_v14 = vsel %vm112_vm4, %v1239_v53, 0.0  ;;  %v220_v16 = vsel %vm184_vm5, %v1250_v58, 0.0  ;;  %vm111_vm6 = vcmp.eq.s32.totalorder %v1212_v37, %v1234_v52  ;;  %v253_v18 = vadd.f32 %v221_v13, %v149_v12 }
  0x2b   :  { %908 = vmatprep.subr.msk.mxu0 %vm1281_vm1, %v255_v9  ;;  %1028 = vmatprep.subr.msk.mxu1 %vm1281_vm1, %v255_v9  ;;  %vm183_vm7 = vcmp.eq.s32.totalorder %v1212_v37, %v1245_v57  ;;  %vm110_vm8 = vcmp.eq.s32.totalorder %v1220_v44, %v1234_v52  ;;  %v252_v20 = vadd.f32 %v220_v16, %v148_v14  ;;  %v147_v21 = vsel %vm111_vm6, %v1239_v53, 0.0 }
  0x2c   :  { %910 = vmatpush1.msk.msra.mxu0 %vm1273_vm0, %v255_v9  ;;  %1060 = vmatpush1.msk.msra.mxu1 %vm1273_vm0, %v255_v9  ;;  %v219_v22 = vsel %vm183_vm7, %v1250_v58, 0.0  ;;  %vm182_vm9 = vcmp.eq.s32.totalorder %v1220_v44, %v1245_v57  ;;  %v146_v23 = vsel %vm110_vm8, %v1239_v53, 0.0  ;;  %vm109_vm10 = vcmp.eq.s32.totalorder %v1223_v45, %v1234_v52 }
  0x2d   :  { %912 = vmatprep.subr.msk.mxu0 %vm1281_vm1, %v254_v11  ;;  %1029 = vmatprep.subr.msk.mxu1 %vm1281_vm1, %v254_v11  ;;  %v218_v25 = vsel %vm182_vm9, %v1250_v58, 0.0  ;;  %vm181_vm11 = vcmp.eq.s32.totalorder %v1223_v45, %v1245_v57  ;;  %vm108_vm13 = vcmp.eq.s32.totalorder %v1306_v17, %v1234_v52  ;;  %vm180_vm14 = vcmp.eq.s32.totalorder %v1306_v17, %v1245_v57 }
  0x2e   :  { %914 = vmatpush1.msk.msra.mxu0 %vm1273_vm0, %v254_v11  ;;  %1061 = vmatpush1.msk.msra.mxu1 %vm1273_vm0, %v254_v11  ;;  %v1346_v26 = vadd.s32 40, %v1191_v15  ;;  %v251_v28 = vadd.f32 %v219_v22, %v147_v21  ;;  %v250_v29 = vadd.f32 %v218_v25, %v146_v23  ;;  %v145_v30 = vsel %vm109_vm10, %v1239_v53, 0.0 }
  0x2f   :  { %916 = vmatprep.subr.msk.mxu0 %vm1281_vm1, %v253_v18  ;;  %1030 = vmatprep.subr.msk.mxu1 %vm1281_vm1, %v253_v18  ;;  %v217_v31 = vsel %vm181_vm11, %v1250_v58, 0.0  ;;  %v144_v33 = vsel %vm108_vm13, %v1239_v53, 0.0  ;;  %v216_v35 = vsel %vm180_vm14, %v1250_v58, 0.0  ;;  %vm107_vm2 = vcmp.eq.s32.totalorder %v1317_v19, %v1234_v52 }
  0x30   :  { %918 = vmatpush1.msk.msra.mxu0 %vm1273_vm0, %v253_v18  ;;  %1062 = vmatpush1.msk.msra.mxu1 %vm1273_vm0, %v253_v18  ;;  %vm179_vm3 = vcmp.eq.s32.totalorder %v1317_v19, %v1245_v57  ;;  %vm106_vm4 = vcmp.eq.s32.totalorder %v1346_v26, %v1234_v52  ;;  %vm178_vm5 = vcmp.eq.s32.totalorder %v1346_v26, %v1245_v57  ;;  %v1384_v40 = vadd.s32 24, %v1191_v15 }
  0x31   :  { %920 = vmatprep.subr.msk.mxu0 %vm1281_vm1, %v252_v20  ;;  %1031 = vmatprep.subr.msk.mxu1 %vm1281_vm1, %v252_v20  ;;  %v249_v39 = vadd.f32 %v217_v31, %v145_v30  ;;  %v248_v41 = vadd.f32 %v216_v35, %v144_v33  ;;  %v143_v43 = vsel %vm107_vm2, %v1239_v53, 0.0  ;;  %v215_v48 = vsel %vm179_vm3, %v1250_v58, 0.0 }
  0x32   :  { %922 = vmatpush1.msk.msra.mxu0 %vm1273_vm0, %v252_v20  ;;  %1063 = vmatpush1.msk.msra.mxu1 %vm1273_vm0, %v252_v20  ;;  %v1393_v49 = vadd.s32 16, %v1191_v15  ;;  %v142_v54 = vsel %vm106_vm4, %v1239_v53, 0.0  ;;  %v214_v55 = vsel %vm178_vm5, %v1250_v58, 0.0  ;;  %vm105_vm6 = vcmp.eq.s32.totalorder %v1359_v32, %v1234_v52 }
  0x33   :  { %924 = vmatprep.subr.msk.mxu0 %vm1281_vm1, %v251_v28  ;;  %1032 = vmatprep.subr.msk.mxu1 %vm1281_vm1, %v251_v28  ;;  %vm177_vm7 = vcmp.eq.s32.totalorder %v1359_v32, %v1245_v57  ;;  %v247_v56 = vadd.f32 %v215_v48, %v143_v43  ;;  %vm104_vm8 = vcmp.eq.s32.totalorder %v1384_v40, %v1234_v52  ;;  %v1418_v59 = vadd.s32 8, %v1191_v15 }
  0x34   :  { %926 = vmatpush1.msk.msra.mxu0 %vm1273_vm0, %v251_v28  ;;  %1064 = vmatpush1.msk.msra.mxu1 %vm1273_vm0, %v251_v28  ;;  %vm176_vm9 = vcmp.eq.s32.totalorder %v1384_v40, %v1245_v57  ;;  %v246_v60 = vadd.f32 %v214_v55, %v142_v54  ;;  %v141_v61 = vsel %vm105_vm6, %v1239_v53, 0.0  ;;  %v213_v63 = vsel %vm177_vm7, %v1250_v58, 0.0 }
  0x35   :  { %928 = vmatprep.subr.msk.mxu0 %vm1281_vm1, %v250_v29  ;;  %1033 = vmatprep.subr.msk.mxu1 %vm1281_vm1, %v250_v29  ;;  %vm103_vm10 = vcmp.eq.s32.totalorder %v1393_v49, %v1234_v52  ;;  %vm175_vm11 = vcmp.eq.s32.totalorder %v1393_v49, %v1245_v57  ;;  %v305_v0 = vadd.f32 %v55_v51, %v52_v46  ;;  %v140_v1 = vsel %vm104_vm8, %v1239_v53, 0.0 }
  0x36   :  { %930 = vmatpush1.msk.msra.mxu0 %vm1273_vm0, %v250_v29  ;;  %1065 = vmatpush1.msk.msra.mxu1 %vm1273_vm0, %v250_v29  ;;  %v212_v2 = vsel %vm176_vm9, %v1250_v58, 0.0  ;;  %vm101_vm13 = vcmp.eq.s32.totalorder %v1191_v15, %v1234_v52  ;;  %vm173_vm14 = vcmp.eq.s32.totalorder %v1191_v15, %v1245_v57  ;;  %v245_v38 = vadd.f32 %v213_v63, %v141_v61 }
  0x37   :  { %932 = vmatprep.subr.msk.mxu0 %vm1281_vm1, %v249_v39  ;;  %1034 = vmatprep.subr.msk.mxu1 %vm1281_vm1, %v249_v39  ;;  %vm102_vm2 = vcmp.eq.s32.totalorder %v1418_v59, %v1234_v52  ;;  %vm174_vm3 = vcmp.eq.s32.totalorder %v1418_v59, %v1245_v57  ;;  %v96_v46 = vadd.s32 248, %v1191_v15  ;;  %v139_v47 = vsel %vm103_vm10, %v1239_v53, 0.0 }
  0x38   :  { %934 = vmatpush1.msk.msra.mxu0 %vm1273_vm0, %v249_v39  ;;  %1066 = vmatpush1.msk.msra.mxu1 %vm1273_vm0, %v249_v39  ;;  %v211_v51 = vsel %vm175_vm11, %v1250_v58, 0.0  ;;  %v95_v3 = vadd.s32 240, %v1191_v15  ;;  %v244_v6 = vadd.f32 %v212_v2, %v140_v1  ;;  %v137_v7 = vsel %vm101_vm13, %v1239_v53, 0.0 }
  0x39   :  { %936 = vmatprep.subr.msk.mxu0 %vm1281_vm1, %v248_v41  ;;  %1035 = vmatprep.subr.msk.mxu1 %vm1281_vm1, %v248_v41  ;;  %v209_v9 = vsel %vm173_vm14, %v1250_v58, 0.0  ;;  %v309_v11 = vrot.slane %v305_v0, %v1200_v27  ;;  %v138_v12 = vsel %vm102_vm2, %v1239_v53, 0.0  ;;  %v210_v13 = vsel %vm174_vm3, %v1250_v58, 0.0 }
  0x3a   :  { %938 = vmatpush1.msk.msra.mxu0 %vm1273_vm0, %v248_v41  ;;  %1067 = vmatpush1.msk.msra.mxu1 %vm1273_vm0, %v248_v41  ;;  %vm273_vm4 = vcmp.eq.s32.totalorder %v1191_v15, 0  ;;  %v243_v14 = vadd.f32 %v211_v51, %v139_v47  ;;  %vm132_vm5 = vcmp.eq.s32.totalorder %v96_v46, %v1234_v52  ;;  %vm204_vm6 = vcmp.eq.s32.totalorder %v96_v46, %v1245_v57 }
  0x3b   :  { %940 = vmatprep.subr.msk.mxu0 %vm1281_vm1, %v247_v56  ;;  %1036 = vmatprep.subr.msk.mxu1 %vm1281_vm1, %v247_v56  ;;  %v94_v16 = vadd.s32 232, %v1191_v15  ;;  %v241_v18 = vadd.f32 %v209_v9, %v137_v7  ;;  %vm131_vm7 = vcmp.eq.s32.totalorder %v95_v3, %v1234_v52  ;;  %v93_v20 = vadd.s32 224, %v1191_v15 }
  0x3c   :  { %942 = vmatpush1.msk.msra.mxu0 %vm1273_vm0, %v247_v56  ;;  %1068 = vmatpush1.msk.msra.mxu1 %vm1273_vm0, %v247_v56  ;;  %v242_v21 = vadd.f32 %v210_v13, %v138_v12  ;;  %v310_v22 = vsel %vm273_vm4, %v309_v11, 0.0  ;;  %vm203_vm8 = vcmp.eq.s32.totalorder %v95_v3, %v1245_v57  ;;  %v345_v23 = vsub.f32 %v1185_v10, %v1196_v24 }
  0x3d   :  { %944 = vmatprep.subr.msk.mxu0 %vm1281_vm1, %v246_v60  ;;  %1037 = vmatprep.subr.msk.mxu1 %vm1281_vm1, %v246_v60  ;;  %v168_v25 = vsel %vm132_vm5, %v1239_v53, 0.0  ;;  %v240_v28 = vsel %vm204_vm6, %v1250_v58, 0.0  ;;  %v92_v29 = vadd.s32 216, %v1191_v15  ;;  %v167_v24 = vsel %vm131_vm7, %v1239_v53, 0.0 }
  0x3e   :  { %946 = vmatpush1.msk.msra.mxu0 %vm1273_vm0, %v246_v60  ;;  %1069 = vmatpush1.msk.msra.mxu1 %vm1273_vm0, %v246_v60  ;;  %vm130_vm9 = vcmp.eq.s32.totalorder %v94_v16, %v1234_v52  ;;  %vm202_vm10 = vcmp.eq.s32.totalorder %v94_v16, %v1245_v57  ;;  %v91_v30 = vadd.s32 208, %v1191_v15  ;;  %v471_v31 = vsel %vm1267_vm15, %v310_v22, %v241_v18 }
  0x3f   :  { %948 = vmatprep.subr.msk.mxu0 %vm1281_vm1, %v245_v38  ;;  %1038 = vmatprep.subr.msk.mxu1 %vm1281_vm1, %v245_v38  ;;  %v239_v33 = vsel %vm203_vm8, %v1250_v58, 0.0  ;;  %vm129_vm11 = vcmp.eq.s32.totalorder %v93_v20, %v1234_v52  ;;  %vm201_vm13 = vcmp.eq.s32.totalorder %v93_v20, %v1245_v57  ;;  %v391_v35 = vsel %vm1257_vm12, %v310_v22, %v241_v18 }
  0x40   :  { %950 = vmatpush1.msk.msra.mxu0 %vm1273_vm0, %v245_v38  ;;  %1070 = vmatpush1.msk.msra.mxu1 %vm1273_vm0, %v245_v38  ;;  %v272_v39 = vadd.f32 %v240_v28, %v168_v25  ;;  %v346_v4 = vand.u32 2147483647, %v345_v23  ;;  %v166_v41 = vsel %vm130_vm9, %v1239_v53, 0.0  ;;  %v238_v43 = vsel %vm202_vm10, %v1250_v58, 0.0 }
  0x41   :  { %952 = vmatprep.subr.msk.mxu0 %vm1281_vm1, %v244_v6  ;;  %1039 = vmatprep.subr.msk.mxu1 %vm1281_vm1, %v244_v6  ;;  %vm128_vm15 = vcmp.eq.s32.totalorder %v92_v29, %v1234_v52  ;;  %vm200_vm12 = vcmp.eq.s32.totalorder %v92_v29, %v1245_v57  ;;  %v271_v62 = vadd.f32 %v239_v33, %v167_v24  ;;  %v165_v48 = vsel %vm129_vm11, %v1239_v53, 0.0 }
  0x42   :  { %954 = vmatpush1.msk.msra.mxu0 %vm1273_vm0, %v244_v6  ;;  %1071 = vmatpush1.msk.msra.mxu1 %vm1273_vm0, %v244_v6  ;;  %v237_v54 = vsel %vm201_vm13, %v1250_v58, 0.0  ;;  %v90_v55 = vadd.s32 200, %v1191_v15  ;;  %vm127_vm14 = vcmp.eq.s32.totalorder %v91_v30, %v1234_v52  ;;  %vm199_vm2 = vcmp.eq.s32.totalorder %v91_v30, %v1245_v57 }
  0x43   :  { %956 = vmatprep.subr.msk.mxu0 %vm1281_vm1, %v243_v14  ;;  %1040 = vmatprep.subr.msk.mxu1 %vm1281_vm1, %v243_v14  ;;  %v270_v56 = vadd.f32 %v238_v43, %v166_v41  ;;  %v164_v60 = vsel %vm128_vm15, %v1239_v53, 0.0  ;;  %v236_v61 = vsel %vm200_vm12, %v1250_v58, 0.0  ;;  %v89_v63 = vadd.s32 192, %v1191_v15 }
  0x44   :  { %958 = vmatpush1.msk.msra.mxu0 %vm1273_vm0, %v243_v14  ;;  %1072 = vmatpush1.msk.msra.mxu1 %vm1273_vm0, %v243_v14  ;;  %v269_v0 = vadd.f32 %v237_v54, %v165_v48  ;;  %v88_v1 = vadd.s32 184, %v1191_v15  ;;  %v347_v2 = vsub.f32 1.0, %v346_v4  ;;  %v163_v38 = vsel %vm127_vm14, %v1239_v53, 0.0 }
  0x45   :  { %960 = vmatprep.subr.msk.mxu0 %vm1281_vm1, %v242_v21  ;;  %1041 = vmatprep.subr.msk.mxu1 %vm1281_vm1, %v242_v21  ;;  %v235_v46 = vsel %vm199_vm2, %v1250_v58, 0.0  ;;  %vm126_vm3 = vcmp.eq.s32.totalorder %v90_v55, %v1234_v52  ;;  %vm198_vm4 = vcmp.eq.s32.totalorder %v90_v55, %v1245_v57  ;;  %v268_v47 = vadd.f32 %v236_v61, %v164_v60 }
  0x46   :  { %962 = vmatpush1.msk.msra.mxu0 %vm1273_vm0, %v242_v21  ;;  %1073 = vmatpush1.msk.msra.mxu1 %vm1273_vm0, %v242_v21  ;;  %vm125_vm5 = vcmp.eq.s32.totalorder %v89_v63, %v1234_v52  ;;  %vm197_vm6 = vcmp.eq.s32.totalorder %v89_v63, %v1245_v57  ;;  %v87_v51 = vadd.s32 176, %v1191_v15  ;;  %v1606_v3 = vrot.slane %v1216_v42, %v1200_v27 }
  0x47   :  { %584 = vmatprep.subr.mxu0 %v471_v31  ;;  %1042 = vmatprep.subr.mxu1 %v471_v31  ;;  %v267_v6 = vadd.f32 %v235_v46, %v163_v38  ;;  %v162_v7 = vsel %vm126_vm3, %v1239_v53, 0.0  ;;  %v234_v9 = vsel %vm198_vm4, %v1250_v58, 0.0  ;;  %v1615_v11 = vrot.slane %v347_v2, %v1200_v27  ;;  %v530_v2 = vld [vmem:[#allocation4 + $0xc0] sm:$0xff]  ;;  %v509_v38 = vld [vmem:[#allocation4 + $0x18] sm:$0xff] }
  0x48   :  { %585 = vmatpush1.msra.mxu0 %v391_v35  ;;  %1074 = vmatpush1.msra.mxu1 %v391_v35  ;;  %vm124_vm7 = vcmp.eq.s32.totalorder %v88_v1, %v1234_v52  ;;  %vm196_vm8 = vcmp.eq.s32.totalorder %v88_v1, %v1245_v57  ;;  %v86_v42 = vadd.s32 168, %v1191_v15  ;;  %vm353_vm9 = vcmp.eq.s32.totalorder %v1191_v15, %v1606_v3  ;;  %v533_v46 = vld [vmem:[#allocation4 + $0xd8] sm:$0xff] }
  0x49   :  { %964 = vmatprep.subr.msk.mxu0 %vm1281_vm1, %v272_v39  ;;  %1043 = vmatprep.subr.msk.mxu1 %vm1281_vm1, %v272_v39  ;;  %v161_v12 = vsel %vm125_vm5, %v1239_v53, 0.0  ;;  %v233_v13 = vsel %vm197_vm6, %v1250_v58, 0.0  ;;  %v1637_v14 = vsel %vm353_vm9, %v1615_v11, 0.0  ;;  %v266_v16 = vadd.f32 %v234_v9, %v162_v7  ;;  %v535_v7 = vld [vmem:[#allocation4 + $0xe8] sm:$0xff]  ;;  %v534_v9 = vld [vmem:[#allocation4 + $0xe0] sm:$0xff] }
  0x4a   :  { %966 = vmatpush2.msk.msra.mxu0 %vm1273_vm0, %v272_v39  ;;  %1075 = vmatpush2.msk.msra.mxu1 %vm1273_vm0, %v272_v39  ;;  %vm123_vm10 = vcmp.eq.s32.totalorder %v87_v51, %v1234_v52  ;;  %vm195_vm11 = vcmp.eq.s32.totalorder %v87_v51, %v1245_v57  ;;  %v85_v18 = vadd.s32 160, %v1191_v15  ;;  %v160_v20 = vsel %vm124_vm7, %v1239_v53, 0.0  ;;  %v532_v51 = vld [vmem:[#allocation4 + $0xd0] sm:$0xff] }
  0x4b   :  { %968 = vmatprep.subr.msk.mxu0 %vm1281_vm1, %v271_v62  ;;  %1044 = vmatprep.subr.msk.mxu1 %vm1281_vm1, %v271_v62  ;;  %v232_v21 = vsel %vm196_vm8, %v1250_v58, 0.0  ;;  %v265_v22 = vadd.f32 %v233_v13, %v161_v12  ;;  %vm122_vm13 = vcmp.eq.s32.totalorder %v86_v42, %v1234_v52  ;;  %vm194_vm15 = vcmp.eq.s32.totalorder %v86_v42, %v1245_v57  ;;  %v513_v42 = vld [vmem:[#allocation4 + $0x38] sm:$0xff]  ;;  %v536_v13 = vld [vmem:[#allocation4 + $0xf0] sm:$0xff] }
  0x4c   :  { %970 = vmatpush2.msk.msra.mxu0 %vm1273_vm0, %v271_v62  ;;  %1076 = vmatpush2.msk.msra.mxu1 %vm1273_vm0, %v271_v62  ;;  %v84_v23 = vadd.s32 152, %v1191_v15  ;;  %v159_v25 = vsel %vm123_vm10, %v1239_v53, 0.0  ;;  %v231_v28 = vsel %vm195_vm11, %v1250_v58, 0.0  ;;  %v264_v29 = vadd.f32 %v232_v21, %v160_v20  ;;  %v537_v12 = vld [vmem:[#allocation4 + $0xf8] sm:$0xff]  ;;  %v514_v20 = vld [vmem:[#allocation4 + $0x40] sm:$0xff] }
  0x4d   :  { %972 = vmatprep.subr.msk.mxu0 %vm1281_vm1, %v270_v56  ;;  %1045 = vmatprep.subr.msk.mxu1 %vm1281_vm1, %v270_v56  ;;  %vm121_vm12 = vcmp.eq.s32.totalorder %v85_v18, %v1234_v52  ;;  %vm193_vm14 = vcmp.eq.s32.totalorder %v85_v18, %v1245_v57  ;;  %v83_v24 = vadd.s32 144, %v1191_v15  ;;  %v158_v30 = vsel %vm122_vm13, %v1239_v53, 0.0  ;;  %v539_v18 = vld [vmem:[#allocation4 + $0x108] sm:$0xff]  ;;  %v538_v21 = vld [vmem:[#allocation4 + $0x100] sm:$0xff] }
  0x4e   :  { %974 = vmatpush2.msk.msra.mxu0 %vm1273_vm0, %v270_v56  ;;  %1077 = vmatpush2.msk.msra.mxu1 %vm1273_vm0, %v270_v56  ;;  %v230_v31 = vsel %vm194_vm15, %v1250_v58, 0.0  ;;  %v263_v33 = vadd.f32 %v231_v28, %v159_v25  ;;  %vm120_vm2 = vcmp.eq.s32.totalorder %v84_v23, %v1234_v52  ;;  %vm192_vm3 = vcmp.eq.s32.totalorder %v84_v23, %v1245_v57  ;;  %v541_v23 = vld [vmem:[#allocation4 + $0x118] sm:$0xff]  ;;  %v516_v25 = vld [vmem:[#allocation4 + $0x50] sm:$0xff] }
  0x4f   :  { %976 = vmatprep.subr.msk.mxu0 %vm1281_vm1, %v269_v0  ;;  %1046 = vmatprep.subr.msk.mxu1 %vm1281_vm1, %v269_v0  ;;  %v82_v35 = vadd.s32 136, %v1191_v15  ;;  %v157_v39 = vsel %vm121_vm12, %v1239_v53, 0.0  ;;  %v229_v4 = vsel %vm193_vm14, %v1250_v58, 0.0  ;;  %v262_v41 = vadd.f32 %v230_v31, %v158_v30  ;;  %v540_v28 = vld [vmem:[#allocation4 + $0x110] sm:$0xff]  ;;  %v518_v30 = vld [vmem:[#allocation4 + $0x60] sm:$0xff] }
  0x50   :  { %978 = vmatpush2.msk.msra.mxu0 %vm1273_vm0, %v269_v0  ;;  %1078 = vmatpush2.msk.msra.mxu1 %vm1273_vm0, %v269_v0  ;;  %vm119_vm4 = vcmp.eq.s32.totalorder %v83_v24, %v1234_v52  ;;  %vm191_vm5 = vcmp.eq.s32.totalorder %v83_v24, %v1245_v57  ;;  %v81_v43 = vadd.s32 128, %v1191_v15  ;;  %v156_v62 = vsel %vm120_vm2, %v1239_v53, 0.0  ;;  %v543_v24 = vld [vmem:[#allocation4 + $0x128] sm:$0xff]  ;;  %v542_v31 = vld [vmem:[#allocation4 + $0x120] sm:$0xff] }
  0x51   :  { %980 = vmatprep.subr.msk.mxu0 %vm1281_vm1, %v268_v47  ;;  %1047 = vmatprep.subr.msk.mxu1 %vm1281_vm1, %v268_v47  ;;  %v228_v48 = vsel %vm192_vm3, %v1250_v58, 0.0  ;;  %v261_v54 = vadd.f32 %v229_v4, %v157_v39  ;;  %vm118_vm6 = vcmp.eq.s32.totalorder %v82_v35, %v1234_v52  ;;  %vm190_vm7 = vcmp.eq.s32.totalorder %v82_v35, %v1245_v57  ;;  %v545_v35 = vld [vmem:[#allocation4 + $0x138] sm:$0xff]  ;;  %v520_v39 = vld [vmem:[#allocation4 + $0x70] sm:$0xff] }
  0x52   :  { %982 = vmatpush2.msk.msra.mxu0 %vm1273_vm0, %v268_v47  ;;  %1079 = vmatpush2.msk.msra.mxu1 %vm1273_vm0, %v268_v47  ;;  %v155_v55 = vsel %vm119_vm4, %v1239_v53, 0.0  ;;  %v227_v56 = vsel %vm191_vm5, %v1250_v58, 0.0  ;;  %v260_v60 = vadd.f32 %v228_v48, %v156_v62  ;;  %vm117_vm8 = vcmp.eq.s32.totalorder %v81_v43, %v1234_v52  ;;  %v508_v47 = vld [vmem:[#allocation4 + $0x10] sm:$0xff]  ;;  %v522_v62 = vld [vmem:[#allocation4 + $0x80] sm:$0xff] }
  0x53   :  { %984 = vmatprep.subr.msk.mxu0 %vm1281_vm1, %v267_v6  ;;  %1048 = vmatprep.subr.msk.mxu1 %vm1281_vm1, %v267_v6  ;;  %vm189_vm9 = vcmp.eq.s32.totalorder %v81_v43, %v1245_v57  ;;  %v154_v61 = vsel %vm118_vm6, %v1239_v53, 0.0  ;;  %v226_v63 = vsel %vm190_vm7, %v1250_v58, 0.0  ;;  %v259_v0 = vadd.f32 %v227_v56, %v155_v55  ;;  %v544_v4 = vld [vmem:[#allocation4 + $0x130] sm:$0xff]  ;;  %v547_v43 = vld [vmem:[#allocation4 + $0x148] sm:$0xff]  ;;  %v546_v48 = vld [vmem:[#allocation4 + $0x140] sm:$0xff] }
  0x54   :  { %986 = vmatpush2.msk.msra.mxu0 %vm1273_vm0, %v267_v6  ;;  %1080 = vmatpush2.msk.msra.mxu1 %vm1273_vm0, %v267_v6  ;;  %v153_v52 = vsel %vm117_vm8, %v1239_v53, 0.0  ;;  %v225_v57 = vsel %vm189_vm9, %v1250_v58, 0.0  ;;  %v258_v1 = vadd.f32 %v226_v63, %v154_v61  ;;  %v506_v58 = vld [vmem:[#allocation4] sm:$0xff]  ;;  %v511_v6 = vld [vmem:[#allocation4 + $0x28] sm:$0xff]  ;;  %v549_v55 = vld [vmem:[#allocation4 + $0x158] sm:$0xff]  ;;  %vm356_vm10 = vcmp.eq.s32.totalorder %v1384_v40, %v1606_v3 }
  0x55   :  { %988 = vmatprep.subr.msk.mxu0 %vm1281_vm1, %v266_v16  ;;  %1049 = vmatprep.subr.msk.mxu1 %vm1281_vm1, %v266_v16  ;;  %v257_v53 = vadd.f32 %v225_v57, %v153_v52  ;;  %v524_v56 = vld [vmem:[#allocation4 + $0x90] sm:$0xff]  ;;  %v527_v61 = vld [vmem:[#allocation4 + $0xa8] sm:$0xff]  ;;  %v550_v52 = vld [vmem:[#allocation4 + $0x160] sm:$0xff]  ;;  %vm357_vm11 = vcmp.eq.s32.totalorder %v1359_v32, %v1606_v3  ;;  %vm358_vm13 = vcmp.eq.s32.totalorder %v1346_v26, %v1606_v3 }
  0x56   :  { %990 = vmatpush2.msk.msra.mxu0 %vm1273_vm0, %v266_v16  ;;  %1081 = vmatpush2.msk.msra.mxu1 %vm1273_vm0, %v266_v16  ;;  %v515_v16 = vld [vmem:[#allocation4 + $0x48] sm:$0xff]  ;;  %v529_v57 = vld [vmem:[#allocation4 + $0xb8] sm:$0xff]  ;;  %vm359_vm15 = vcmp.eq.s32.totalorder %v1317_v19, %v1606_v3  ;;  %vm360_vm12 = vcmp.eq.s32.totalorder %v1306_v17, %v1606_v3  ;;  %vm361_vm14 = vcmp.eq.s32.totalorder %v1223_v45, %v1606_v3 }
  0x57   :  { %992 = vmatprep.subr.msk.mxu0 %vm1281_vm1, %v265_v22  ;;  %1050 = vmatprep.subr.msk.mxu1 %vm1281_vm1, %v265_v22  ;;  %v551_v63 = vld [vmem:[#allocation4 + $0x168] sm:$0xff]  ;;  %vm362_vm2 = vcmp.eq.s32.totalorder %v1220_v44, %v1606_v3  ;;  %vm363_vm3 = vcmp.eq.s32.totalorder %v1212_v37, %v1606_v3  ;;  %vm364_vm4 = vcmp.eq.s32.totalorder %v1209_v36, %v1606_v3 }
  0x58   :  { %994 = vmatpush2.msk.msra.mxu0 %vm1273_vm0, %v265_v22  ;;  %1082 = vmatpush2.msk.msra.mxu1 %vm1273_vm0, %v265_v22  ;;  %v517_v22 = vld [vmem:[#allocation4 + $0x58] sm:$0xff] }
  0x59   :  { %996 = vmatprep.subr.msk.mxu0 %vm1281_vm1, %v264_v29  ;;  %1051 = vmatprep.subr.msk.mxu1 %vm1281_vm1, %v264_v29 }
  0x5a   :  { %998 = vmatpush2.msk.msra.mxu0 %vm1273_vm0, %v264_v29  ;;  %1083 = vmatpush2.msk.msra.mxu1 %vm1273_vm0, %v264_v29  ;;  %v519_v29 = vld [vmem:[#allocation4 + $0x68] sm:$0xff] }
  0x5b   :  { %1000 = vmatprep.subr.msk.mxu0 %vm1281_vm1, %v263_v33  ;;  %1052 = vmatprep.subr.msk.mxu1 %vm1281_vm1, %v263_v33 }
  0x5c   :  { %1002 = vmatpush2.msk.msra.mxu0 %vm1273_vm0, %v263_v33  ;;  %1084 = vmatpush2.msk.msra.mxu1 %vm1273_vm0, %v263_v33  ;;  %v521_v33 = vld [vmem:[#allocation4 + $0x78] sm:$0xff] }
  0x5d   :  { %1004 = vmatprep.subr.msk.mxu0 %vm1281_vm1, %v262_v41  ;;  %1053 = vmatprep.subr.msk.mxu1 %vm1281_vm1, %v262_v41 }
  0x5e   :  { %1006 = vmatpush2.msk.msra.mxu0 %vm1273_vm0, %v262_v41  ;;  %1085 = vmatpush2.msk.msra.mxu1 %vm1273_vm0, %v262_v41  ;;  %v523_v41 = vld [vmem:[#allocation4 + $0x88] sm:$0xff] }
  0x5f   :  { %1008 = vmatprep.subr.msk.mxu0 %vm1281_vm1, %v261_v54  ;;  %1054 = vmatprep.subr.msk.mxu1 %vm1281_vm1, %v261_v54 }
  0x60   :  { %1010 = vmatpush2.msk.msra.mxu0 %vm1273_vm0, %v261_v54  ;;  %1086 = vmatpush2.msk.msra.mxu1 %vm1273_vm0, %v261_v54  ;;  %v525_v54 = vld [vmem:[#allocation4 + $0x98] sm:$0xff] }
  0x61   :  { %1012 = vmatprep.subr.msk.mxu0 %vm1281_vm1, %v260_v60  ;;  %1055 = vmatprep.subr.msk.mxu1 %vm1281_vm1, %v260_v60 }
  0x62   :  { %1014 = vmatpush2.msk.msra.mxu0 %vm1273_vm0, %v260_v60  ;;  %1087 = vmatpush2.msk.msra.mxu1 %vm1273_vm0, %v260_v60  ;;  %v548_v60 = vld [vmem:[#allocation4 + $0x150] sm:$0xff] }
  0x63   :  { %1016 = vmatprep.subr.msk.mxu0 %vm1281_vm1, %v259_v0  ;;  %1056 = vmatprep.subr.msk.mxu1 %vm1281_vm1, %v259_v0 }
  0x64   :  { %1018 = vmatpush2.msk.msra.mxu0 %vm1273_vm0, %v259_v0  ;;  %1088 = vmatpush2.msk.msra.mxu1 %vm1273_vm0, %v259_v0  ;;  %v526_v0 = vld [vmem:[#allocation4 + $0xa0] sm:$0xff] }
  0x65   :  { %1020 = vmatprep.subr.msk.mxu0 %vm1281_vm1, %v258_v1  ;;  %1057 = vmatprep.subr.msk.mxu1 %vm1281_vm1, %v258_v1 }
  0x66   :  { %1022 = vmatpush2.msk.msra.mxu0 %vm1273_vm0, %v258_v1  ;;  %1089 = vmatpush2.msk.msra.mxu1 %vm1273_vm0, %v258_v1  ;;  %v553_v1 = vld [vmem:[#allocation4 + $0x178] sm:$0xff] }
  0x67   :  { %1024 = vmatprep.subr.msk.mxu0 %vm1281_vm1, %v257_v53  ;;  %1058 = vmatprep.subr.msk.mxu1 %vm1281_vm1, %v257_v53  ;;  %vm355_vm1 = vcmp.eq.s32.totalorder %v1393_v49, %v1606_v3 }
  0x68   :  { %1026 = vmatpush2.msk.msra.mxu0 %vm1273_vm0, %v257_v53  ;;  %1090 = vmatpush2.msk.msra.mxu1 %vm1273_vm0, %v257_v53  ;;  %v528_v53 = vld [vmem:[#allocation4 + $0xb0] sm:$0xff]  ;;  %vm354_vm0 = vcmp.eq.s32.totalorder %v1418_v59, %v1606_v3  ;;  %v426_v3 = vsub.f32 %v1185_v10, %v1205_v34  ;;  %v1831_v34 = vrot.slane %v1230_v50, %v1200_v27 }
  0x69   :  { %619 = vmatmul.mubr.f32.vlgmr.msra.gmra.mxu0 %v506_v58  ;;  %691 = vmatmul.mubr.f32.vlgmr.msra.gmra.mxu1 %v530_v2  ;;  %v552_v58 = vld [vmem:[#allocation4 + $0x170] sm:$0xff]  ;;  %v370_v2 = vsel %vm354_vm0, %v1615_v11, 0.0 }
  0x6a   :  { %624 = vmatprep.mubr.f32.mxu0 %v509_v38  ;;  %696 = vmatprep.mubr.f32.mxu1 %v533_v46  ;;  %v371_v38 = vsel %vm355_vm1, %v1615_v11, 0.0  ;;  %v372_v46 = vsel %vm356_vm10, %v1615_v11, 0.0  ;;  %vm435_vm5 = vcmp.eq.s32.totalorder %v1418_v59, %v1831_v34  ;;  %vm434_vm6 = vcmp.eq.s32.totalorder %v1191_v15, %v1831_v34 }
  0x6b   :  { %vm436_vm7 = vcmp.eq.s32.totalorder %v1393_v49, %v1831_v34  ;;  %vm437_vm8 = vcmp.eq.s32.totalorder %v1384_v40, %v1831_v34  ;;  %vm438_vm9 = vcmp.eq.s32.totalorder %v1359_v32, %v1831_v34  ;;  %vm439_vm0 = vcmp.eq.s32.totalorder %v1346_v26, %v1831_v34 }
  0x6c   :  { %vm440_vm1 = vcmp.eq.s32.totalorder %v1317_v19, %v1831_v34  ;;  %vm441_vm10 = vcmp.eq.s32.totalorder %v1306_v17, %v1831_v34 }
  0x6d   :  { %625 = vmatmul.mubr.f32.gmra.mxu0 %v508_v47  ;;  %697 = vmatmul.mubr.f32.gmra.mxu1 %v532_v51  ;;  %v373_v47 = vsel %vm357_vm11, %v1615_v11, 0.0  ;;  %v1789_v51 = vsel %vm358_vm13, %v1615_v11, 0.0  ;;  %vm442_vm11 = vcmp.eq.s32.totalorder %v1223_v45, %v1831_v34  ;;  %vm443_vm13 = vcmp.eq.s32.totalorder %v1220_v44, %v1831_v34 }
  0x6e   :  { %630 = vmatprep.mubr.f32.mxu0 %v511_v6  ;;  %702 = vmatprep.mubr.f32.mxu1 %v535_v7  ;;  %v1794_v6 = vsel %vm359_vm15, %v1615_v11, 0.0  ;;  %v1799_v7 = vsel %vm360_vm12, %v1615_v11, 0.0  ;;  %vm444_vm15 = vcmp.eq.s32.totalorder %v1212_v37, %v1831_v34  ;;  %vm445_vm12 = vcmp.eq.s32.totalorder %v1209_v36, %v1831_v34 }
  0x71   :  { %631 = vmatmul.mubr.f32.gmra.mxu0 %v510_v8  ;;  %703 = vmatmul.mubr.f32.gmra.mxu1 %v534_v9  ;;  %v1804_v8 = vsel %vm361_vm14, %v1615_v11, 0.0  ;;  %v1809_v9 = vsel %vm362_vm2, %v1615_v11, 0.0  ;;  %vm883_vm14 = vcmask 1041409  }
  0x72   :  { %636 = vmatprep.mubr.f32.mxu0 %v513_v42  ;;  %708 = vmatprep.mubr.f32.mxu1 %v537_v12  ;;  %v1814_v42 = vsel %vm363_vm3, %v1615_v11, 0.0  ;;  %v1819_v12 = vsel %vm364_vm4, %v1615_v11, 0.0 }
  0x75   :  { %637 = vmatmul.mubr.f32.gmra.mxu0 %v512_v5  ;;  %709 = vmatmul.mubr.f32.gmra.mxu1 %v536_v13 }
  0x76   :  { %642 = vmatprep.mubr.f32.mxu0 %v515_v16  ;;  %714 = vmatprep.mubr.f32.mxu1 %v539_v18 }
  0x79   :  { %643 = vmatmul.mubr.f32.gmra.mxu0 %v514_v20  ;;  %715 = vmatmul.mubr.f32.gmra.mxu1 %v538_v21 }
  0x7a   :  { %648 = vmatprep.mubr.f32.mxu0 %v517_v22  ;;  %720 = vmatprep.mubr.f32.mxu1 %v541_v23 }
  0x7d   :  { %649 = vmatmul.mubr.f32.gmra.mxu0 %v516_v25  ;;  %721 = vmatmul.mubr.f32.gmra.mxu1 %v540_v28 }
  0x7e   :  { %654 = vmatprep.mubr.f32.mxu0 %v519_v29  ;;  %726 = vmatprep.mubr.f32.mxu1 %v543_v24 }
  0x81   :  { %655 = vmatmul.mubr.f32.gmra.mxu0 %v518_v30  ;;  %727 = vmatmul.mubr.f32.gmra.mxu1 %v542_v31 }
  0x82   :  { %660 = vmatprep.mubr.f32.mxu0 %v521_v33  ;;  %732 = vmatprep.mubr.f32.mxu1 %v545_v35 }
  0x85   :  { %661 = vmatmul.mubr.f32.gmra.mxu0 %v520_v39  ;;  %733 = vmatmul.mubr.f32.gmra.mxu1 %v544_v4 }
  0x86   :  { %666 = vmatprep.mubr.f32.mxu0 %v523_v41  ;;  %738 = vmatprep.mubr.f32.mxu1 %v547_v43  ;;  %v427_v43 = vand.u32 2147483647, %v426_v3 }
  0x89   :  { %667 = vmatmul.mubr.f32.gmra.mxu0 %v522_v62  ;;  %739 = vmatmul.mubr.f32.gmra.mxu1 %v546_v48 }
  0x8a   :  { %672 = vmatprep.mubr.f32.mxu0 %v525_v54  ;;  %744 = vmatprep.mubr.f32.mxu1 %v549_v55 }
  0x8d   :  { %673 = vmatmul.mubr.f32.gmra.mxu0 %v524_v56  ;;  %745 = vmatmul.mubr.f32.gmra.mxu1 %v548_v60 }
  0x8e   :  { %678 = vmatprep.mubr.f32.mxu0 %v527_v61  ;;  %750 = vmatprep.mubr.f32.mxu1 %v551_v63  ;;  %v428_v63 = vsub.f32 1.0, %v427_v43 }
  0x91   :  { %679 = vmatmul.mubr.f32.gmra.mxu0 %v526_v0  ;;  %751 = vmatmul.mubr.f32.gmra.mxu1 %v550_v52 }
  0x92   :  { %684 = vmatprep.mubr.f32.mxu0 %v529_v57  ;;  %756 = vmatprep.mubr.f32.mxu1 %v553_v1 }
  0x95   :  { %685 = vmatmul.mubr.f32.gmra.mxu0 %v528_v53  ;;  %757 = vmatmul.mubr.f32.gmra.mxu1 %v552_v58 }
 0x129   :  { %v620_v5 = vpop.f32.mrf.mxu0  ;;  %v692_v13 = vpop.f32.mrf.mxu1 }
 0x12a   :  { %v763_v22 = vmul.f32 %v620_v5, %v1637_v14  ;;  %v787_v23 = vmul.f32 %v692_v13, %v1637_v14 }
 0x12b   :  { %v1821_v16 = vpop.f32.mrf.mxu0  ;;  %v1823_v18 = vpop.f32.mrf.mxu1 }
 0x12d   :  { %v626_v20 = vpop.f32.mrf.mxu0  ;;  %v698_v21 = vpop.f32.mrf.mxu1 }
 0x12e   :  { %v765_v25 = vmul.f32 %v626_v20, %v370_v2  ;;  %v789_v28 = vmul.f32 %v698_v21, %v370_v2 }
 0x12f   :  { %v628_v29 = vpop.f32.mrf.mxu0  ;;  %v700_v24 = vpop.f32.mrf.mxu1 }
 0x130   :  { %v811_v11 = vadd.f32 %v765_v25, %v763_v22  ;;  %v845_v30 = vadd.f32 %v789_v28, %v787_v23 }
 0x131   :  { %v632_v31 = vpop.f32.mrf.mxu0  ;;  %v704_v33 = vpop.f32.mrf.mxu1 }
 0x132   :  { %v767_v35 = vmul.f32 %v632_v31, %v371_v38  ;;  %v791_v39 = vmul.f32 %v704_v33, %v371_v38  ;;  %v1836_v38 = vrot.slane %v428_v63, %v1200_v27 }
 0x133   :  { %v634_v4 = vpop.f32.mrf.mxu0  ;;  %v706_v41 = vpop.f32.mrf.mxu1 }
 0x134   :  { %v812_v62 = vadd.f32 %v811_v11, %v767_v35  ;;  %v846_v48 = vadd.f32 %v845_v30, %v791_v39  ;;  %v450_v22 = vsel %vm434_vm6, %v1836_v38, 0.0  ;;  %v452_v15 = vsel %vm436_vm7, %v1836_v38, 0.0 }
 0x135   :  { %v638_v54 = vpop.f32.mrf.mxu0  ;;  %v710_v14 = vpop.f32.mrf.mxu1  ;;  %v764_v31 = vmul.f32 %v1821_v16, %v450_v22  ;;  %v788_v33 = vmul.f32 %v1823_v18, %v450_v22  ;;  %v454_v32 = vsel %vm438_vm9, %v1836_v38, 0.0  ;;  %v455_v16 = vsel %vm439_vm0, %v1836_v38, 0.0 }
 0x136   :  { %v769_v55 = vmul.f32 %v638_v54, %v372_v46  ;;  %v793_v56 = vmul.f32 %v710_v14, %v372_v46  ;;  %v458_v17 = vsel %vm442_vm11, %v1836_v38, 0.0 }
 0x137   :  { %v640_v60 = vpop.f32.mrf.mxu0  ;;  %v712_v61 = vpop.f32.mrf.mxu1 }
 0x138   :  { %v813_v0 = vadd.f32 %v812_v62, %v769_v55  ;;  %v847_v10 = vadd.f32 %v846_v48, %v793_v56 }
 0x139   :  { %v644_v52 = vpop.f32.mrf.mxu0  ;;  %v716_v57 = vpop.f32.mrf.mxu1 }
 0x13a   :  { %v771_v1 = vmul.f32 %v644_v52, %v373_v47  ;;  %v795_v53 = vmul.f32 %v716_v57, %v373_v47  ;;  %v451_v47 = vsel %vm435_vm5, %v1836_v38, 0.0  ;;  %v456_v52 = vsel %vm440_vm1, %v1836_v38, 0.0 }
 0x13b   :  { %v646_v58 = vpop.f32.mrf.mxu0  ;;  %v718_v2 = vpop.f32.mrf.mxu1  ;;  %v766_v49 = vmul.f32 %v628_v29, %v451_v47  ;;  %v790_v28 = vmul.f32 %v700_v24, %v451_v47  ;;  %v768_v29 = vmul.f32 %v634_v4, %v452_v15  ;;  %v792_v24 = vmul.f32 %v706_v41, %v452_v15 }
 0x13c   :  { %v814_v46 = vadd.f32 %v813_v0, %v771_v1  ;;  %v848_v5 = vadd.f32 %v847_v10, %v795_v53  ;;  %v772_v0 = vmul.f32 %v646_v58, %v454_v32  ;;  %v796_v10 = vmul.f32 %v718_v2, %v454_v32 }
 0x13d   :  { %v650_v50 = vpop.f32.mrf.mxu0  ;;  %v722_v13 = vpop.f32.mrf.mxu1  ;;  %v828_v48 = vadd.f32 %v766_v49, %v764_v31  ;;  %v862_v54 = vadd.f32 %v790_v28, %v788_v33  ;;  %v457_v58 = vsel %vm441_vm10, %v1836_v38, 0.0  ;;  %v460_v32 = vsel %vm444_vm15, %v1836_v38, 0.0 }
 0x13e   :  { %v773_v20 = vmul.f32 %v650_v50, %v1789_v51  ;;  %v797_v59 = vmul.f32 %v722_v13, %v1789_v51  ;;  %v453_v51 = vsel %vm437_vm8, %v1836_v38, 0.0 }
 0x13f   :  { %v652_v27 = vpop.f32.mrf.mxu0  ;;  %v724_v21 = vpop.f32.mrf.mxu1  ;;  %v770_v14 = vmul.f32 %v640_v60, %v453_v51  ;;  %v794_v55 = vmul.f32 %v712_v61, %v453_v51  ;;  %v829_v41 = vadd.f32 %v828_v48, %v768_v29  ;;  %v863_v63 = vadd.f32 %v862_v54, %v792_v24 }
 0x140   :  { %v815_v23 = vadd.f32 %v814_v46, %v773_v20  ;;  %v849_v25 = vadd.f32 %v848_v5, %v797_v59  ;;  %v774_v53 = vmul.f32 %v652_v27, %v455_v16  ;;  %v798_v46 = vmul.f32 %v724_v21, %v455_v16 }
 0x141   :  { %v656_v3 = vpop.f32.mrf.mxu0  ;;  %v728_v11 = vpop.f32.mrf.mxu1  ;;  %v864_v1 = vadd.f32 %v863_v63, %v794_v55 }
 0x142   :  { %v775_v40 = vmul.f32 %v656_v3, %v1794_v6  ;;  %v799_v30 = vmul.f32 %v728_v11, %v1794_v6 }
 0x143   :  { %v658_v35 = vpop.f32.mrf.mxu0  ;;  %v730_v39 = vpop.f32.mrf.mxu1  ;;  %v865_v47 = vadd.f32 %v864_v1, %v796_v10 }
 0x144   :  { %v816_v43 = vadd.f32 %v815_v23, %v775_v40  ;;  %v850_v62 = vadd.f32 %v849_v25, %v799_v30  ;;  %v776_v20 = vmul.f32 %v658_v35, %v456_v52  ;;  %v800_v59 = vmul.f32 %v730_v39, %v456_v52 }
 0x145   :  { %v662_v6 = vpop.f32.mrf.mxu0  ;;  %v734_v56 = vpop.f32.mrf.mxu1  ;;  %v866_v23 = vadd.f32 %v865_v47, %v798_v46  ;;  %v459_v40 = vsel %vm443_vm13, %v1836_v38, 0.0  ;;  %v461_v52 = vsel %vm445_vm12, %v1836_v38, 0.0 }
 0x146   :  { %v777_v18 = vmul.f32 %v662_v6, %v1799_v7  ;;  %v801_v4 = vmul.f32 %v734_v56, %v1799_v7  ;;  %v830_v7 = vadd.f32 %v829_v41, %v770_v14 }
 0x147   :  { %v664_v60 = vpop.f32.mrf.mxu0  ;;  %v736_v61 = vpop.f32.mrf.mxu1  ;;  %v867_v30 = vadd.f32 %v866_v23, %v800_v59 }
 0x148   :  { %v817_v26 = vadd.f32 %v816_v43, %v777_v18  ;;  %v851_v57 = vadd.f32 %v850_v62, %v801_v4  ;;  %v831_v13 = vadd.f32 %v830_v7, %v772_v0  ;;  %v778_v25 = vmul.f32 %v664_v60, %v457_v58 }
 0x149   :  { %v668_v5 = vpop.f32.mrf.mxu0  ;;  %v740_v50 = vpop.f32.mrf.mxu1  ;;  %v802_v49 = vmul.f32 %v736_v61, %v457_v58 }
 0x14a   :  { %v779_v2 = vmul.f32 %v668_v5, %v1804_v8  ;;  %v803_v19 = vmul.f32 %v740_v50, %v1804_v8  ;;  %v832_v8 = vadd.f32 %v831_v13, %v774_v53 }
 0x14b   :  { %v670_v27 = vpop.f32.mrf.mxu0  ;;  %v742_v21 = vpop.f32.mrf.mxu1 }
 0x14c   :  { %v818_v22 = vadd.f32 %v817_v26, %v779_v2  ;;  %v852_v15 = vadd.f32 %v851_v57, %v803_v19  ;;  %v833_v45 = vadd.f32 %v832_v8, %v776_v20  ;;  %v780_v31 = vmul.f32 %v670_v27, %v458_v17 }
 0x14d   :  { %v674_v28 = vpop.f32.mrf.mxu0  ;;  %v746_v3 = vpop.f32.mrf.mxu1  ;;  %v804_v33 = vmul.f32 %v742_v21, %v458_v17 }
 0x14e   :  { %v781_v11 = vmul.f32 %v674_v28, %v1809_v9  ;;  %v805_v51 = vmul.f32 %v746_v3, %v1809_v9  ;;  %v834_v43 = vadd.f32 %v833_v45, %v778_v25  ;;  %v868_v9 = vadd.f32 %v867_v30, %v802_v49 }
 0x14f   :  { %v676_v29 = vpop.f32.mrf.mxu0  ;;  %v748_v24 = vpop.f32.mrf.mxu1 }
 0x150   :  { %v819_v35 = vadd.f32 %v818_v22, %v781_v11  ;;  %v853_v39 = vadd.f32 %v852_v15, %v805_v51  ;;  %v782_v62 = vmul.f32 %v676_v29, %v459_v40  ;;  %v806_v48 = vmul.f32 %v748_v24, %v459_v40 }
 0x151   :  { %v680_v54 = vpop.f32.mrf.mxu0  ;;  %v752_v44 = vpop.f32.mrf.mxu1  ;;  %v835_v6 = vadd.f32 %v834_v43, %v780_v31  ;;  %v869_v56 = vadd.f32 %v868_v9, %v804_v33 }
 0x152   :  { %v783_v14 = vmul.f32 %v680_v54, %v1814_v42  ;;  %v807_v55 = vmul.f32 %v752_v44, %v1814_v42 }
 0x153   :  { %v682_v16 = vpop.f32.mrf.mxu0  ;;  %v754_v18 = vpop.f32.mrf.mxu1  ;;  %v836_v0 = vadd.f32 %v835_v6, %v782_v62  ;;  %v870_v10 = vadd.f32 %v869_v56, %v806_v48 }
 0x154   :  { %v820_v4 = vadd.f32 %v819_v35, %v783_v14  ;;  %v854_v37 = vadd.f32 %v853_v39, %v807_v55  ;;  %v784_v41 = vmul.f32 %v682_v16, %v460_v32  ;;  %v808_v63 = vmul.f32 %v754_v18, %v460_v32 }
 0x155   :  { %v686_v60 = vpop.f32.mrf.mxu0  ;;  %v758_v61 = vpop.f32.mrf.mxu1 }
 0x156   :  { %v785_v26 = vmul.f32 %v686_v60, %v1819_v12  ;;  %v809_v42 = vmul.f32 %v758_v61, %v1819_v12  ;;  %v837_v57 = vadd.f32 %v836_v0, %v784_v41  ;;  %v871_v36 = vadd.f32 %v870_v10, %v808_v63 }
 0x157   :  { %v688_v34 = vpop.f32.mrf.mxu0  ;;  %v760_v7 = vpop.f32.mrf.mxu1 }
 0x158   :  { %v821_v1 = vadd.f32 %v820_v4, %v785_v26  ;;  %v855_v53 = vadd.f32 %v854_v37, %v809_v42  ;;  %v786_v46 = vmul.f32 %v688_v34, %v461_v52  ;;  %v810_v5 = vmul.f32 %v760_v7, %v461_v52 }
 0x15a   :  { %v822_v50 = vrot.slane %v821_v1, 4  ;;  %v856_v58 = vrot.slane %v855_v53, 4  ;;  %v838_v2 = vadd.f32 %v837_v57, %v786_v46  ;;  %v872_v19 = vadd.f32 %v871_v36, %v810_v5 }
 0x15c   :  { %v823_v13 = vadd.f32 %v822_v50, %v821_v1  ;;  %v857_v47 = vadd.f32 %v856_v58, %v855_v53  ;;  %v839_v20 = vrot.slane %v838_v2, 4  ;;  %v873_v38 = vrot.slane %v872_v19, 4 }
 0x15e   :  { %v824_v59 = vrot.slane %v823_v13, 2  ;;  %v858_v27 = vrot.slane %v857_v47, 2  ;;  %v840_v21 = vadd.f32 %v839_v20, %v838_v2  ;;  %v874_v12 = vadd.f32 %v873_v38, %v872_v19 }
 0x160   :  { %v825_v22 = vadd.f32 %v824_v59, %v823_v13  ;;  %v859_v15 = vadd.f32 %v858_v27, %v857_v47  ;;  %v841_v17 = vrot.slane %v840_v21, 2  ;;  %v875_v8 = vrot.slane %v874_v12, 2 }
 0x162   :  { %v826_v23 = vrot.slane %v825_v22, 1  ;;  %v860_v25 = vrot.slane %v859_v15, 1  ;;  %v842_v49 = vadd.f32 %v841_v17, %v840_v21  ;;  %v876_v28 = vadd.f32 %v875_v8, %v874_v12 }
 0x164   :  { %v843_v3 = vrot.slane %v842_v49, 1  ;;  %v877_v11 = vrot.slane %v876_v28, 1  ;;  %v827_v51 = vadd.f32 %v826_v23, %v825_v22  ;;  %v861_v40 = vadd.f32 %v860_v25, %v859_v15 }
 0x166   :  { %v844_v45 = vadd.f32 %v843_v3, %v842_v49  ;;  %v878_v30 = vadd.f32 %v877_v11, %v876_v28 }
 0x168   :  { %v879_v31 = vadd.f32 %v844_v45, %v827_v51  ;;  %v880_v33 = vadd.f32 %v878_v30, %v861_v40 }
 0x16a   :  { %v884_v29 = vsel %vm883_vm14, %v880_v33, %v879_v31 }
 0x16b   :  { %886 = vst [vmem:[#allocation7] sm:$0x3] %v884_v29 }
 0x16c   :  { %1135 = shalt.err (!%p1132_p9)
}
 0x16d   :  { %896 = dma.vmem_to_hbm [thread:$0]  %s894_s30, 32, %s1912_s3, [#allocation6]  }
 0x16e   :  { %1146 = dma.done.wait [#allocation6], 32  }
 0x16f   :  { %1147 = vsyncadd [#allocation6], 4294967264 }
 0x170   :  { %900 = vsyncpa [#allocation5], 1 }
 0x171   :  { %901 = vsyncpa [#allocation6], 1 }

</bundles_post_ra>
